<compile_context>
chip_gen: v7x
topology: tpu7x:2x2x1
jax: 0.10.0
libtpu: 0.0.40
codegen_flags: <defaults>
</compile_context>

<pallas_src>
import functools

import jax
import jax.numpy as jnp
from jax.experimental import pallas as pl
from jax.experimental.pallas import tpu as pltpu


def _round_up(x, m):
    return ((x + m - 1) // m) * m


def _plan(n, fout):
    """Pick padded sizes and stage-2 tiles (TM rows, TK contraction)."""
    fout_pad = _round_up(fout, 128)              # lane-dense output / MXU N-dim
    if n <= 4096:
        n_pad = _round_up(n, 128)                # lane-dense even for tiny graphs
        tm = 128
        for cand in (1024, 512, 256):            # biggest row tile dividing n_pad
            if n_pad % cand == 0:
                tm = cand
                break
        tk = n_pad                               # single contraction step
    else:
        n_pad = _round_up(n, 1024)
        tm = 1024
        tk = 1024
    # Keep support VMEM-resident unless it alone would eat too much VMEM (v7x: 64 MiB/TC).
    resident = (n_pad * fout_pad * 2) <= (20 << 20)
    return n_pad, fout_pad, tm, tk, resident


# ----------------------------- Stage 1 kernels -------------------------------
# support = dropout(x) @ W      (bf16 inputs -> MXU -> f32 -> bf16 store)
def _support_kernel(x_ref, w_ref, s_ref):
    s = jnp.dot(x_ref[...], w_ref[...], preferred_element_type=jnp.float32)
    s_ref[...] = s.astype(s_ref.dtype)


def _support_dropout_kernel(x_ref, mask_ref, w_ref, s_ref, *, scale):
    xm = x_ref[...] * mask_ref[...]                      # bf16 keep-mask (exact 0/x)
    s = jnp.dot(xm, w_ref[...], preferred_element_type=jnp.float32)
    s_ref[...] = (s * scale).astype(s_ref.dtype)         # 1/(1-p) applied post-dot (f32)


# ----------------------------- Stage 2 kernel --------------------------------
# out = relu(adj @ support), tiled over (row tile i, contraction tile k).
# Output block is resident across k (out_specs index_map = (i, 0)); accumulate
# directly into it -- no scratch, no finish-step copy.
def _aggregate_kernel(adj_ref, s_ref, o_ref):
    k = pl.program_id(1)

    @pl.when(k == 0)
    def _init():
        o_ref[...] = jnp.zeros_like(o_ref)

    o_ref[...] += jnp.dot(adj_ref[...], s_ref[...],
                          preferred_element_type=jnp.float32)   # bf16 x bf16 -> f32 MXU

    @pl.when(k == pl.num_programs(1) - 1)
    def _finish():
        o_ref[...] = jnp.maximum(o_ref[...], 0.0)


# ------------------------------- Wrapper -------------------------------------
@functools.partial(jax.jit, static_argnames=("dropout_p", "use_dropout"))
def _gcn_impl(x, weight, adj, rng_key, *, dropout_p, use_dropout):
    n, fin = x.shape
    fout = weight.shape[1]
    n_pad, fout_pad, tm, tk, resident = _plan(n, fout)

    # Cast BEFORE padding so the wrapper moves bf16 (not f32) bytes; under jit
    # the pad+cast fuse.  Zero-padding is exact for this computation.
    x_p = jnp.pad(x.astype(jnp.bfloat16), ((0, n_pad - n), (0, 0)))
    w_p = jnp.pad(weight.astype(jnp.bfloat16), ((0, 0), (0, fout_pad - fout)))
    adj_p = jnp.pad(adj.astype(jnp.bfloat16), ((0, n_pad - n), (0, n_pad - n)))

    # ---- Stage 1: support = dropout(x) @ W  (computed once, bf16 output) ----
    if use_dropout:
        keep = jax.random.bernoulli(rng_key, 1.0 - dropout_p, (n_pad, fin))
        mask = keep.astype(jnp.bfloat16)
        kern = functools.partial(_support_dropout_kernel,
                                 scale=float(1.0 / (1.0 - dropout_p)))
        in_specs = [
            pl.BlockSpec((tm, fin), lambda i: (i, 0)),
            pl.BlockSpec((tm, fin), lambda i: (i, 0)),
            pl.BlockSpec((fin, fout_pad), lambda i: (0, 0)),
        ]
        args = (x_p, mask, w_p)
    else:
        # Eval: no all-ones mask stream, no mask multiply.
        kern = _support_kernel
        in_specs = [
            pl.BlockSpec((tm, fin), lambda i: (i, 0)),
            pl.BlockSpec((fin, fout_pad), lambda i: (0, 0)),
        ]
        args = (x_p, w_p)

    support = pl.pallas_call(
        kern,
        out_shape=jax.ShapeDtypeStruct((n_pad, fout_pad), jnp.bfloat16),
        grid=(n_pad // tm,),
        in_specs=in_specs,
        out_specs=pl.BlockSpec((tm, fout_pad), lambda i: (i, 0)),
        compiler_params=pltpu.CompilerParams(dimension_semantics=("parallel",)),
    )(*args)

    # ---- Stage 2: out = relu(adj @ support) ----
    if resident:
        # support DMA'd into VMEM once for the whole kernel.
        sup_spec = pl.BlockSpec((n_pad, fout_pad), lambda i, k: (0, 0))
        sup_bytes = n_pad * fout_pad * 2
    else:
        # Fallback for very large graphs: stream the k-slab of support.
        sup_spec = pl.BlockSpec((tk, fout_pad), lambda i, k: (k, 0))
        sup_bytes = 2 * tk * fout_pad * 2

    vmem_need = (2 * tm * tk * 2          # double-buffered bf16 adj tiles
                 + sup_bytes              # support (resident or double-buffered slab)
                 + 2 * tm * fout_pad * 4)  # f32 output block(s)
    vmem_limit = int(min(max(int(1.5 * vmem_need), 16 << 20), 48 << 20))

    out_p = pl.pallas_call(
        _aggregate_kernel,
        out_shape=jax.ShapeDtypeStruct((n_pad, fout_pad), jnp.float32),
        grid=(n_pad // tm, n_pad // tk),
        in_specs=[
            pl.BlockSpec((tm, tk), lambda i, k: (i, k)),   # adj tile stream (dominant)
            sup_spec,
        ],
        out_specs=pl.BlockSpec((tm, fout_pad), lambda i, k: (i, 0)),
        compiler_params=pltpu.CompilerParams(
            dimension_semantics=("parallel", "arbitrary"),  # row tiles shard across TCs (v7x)
            vmem_limit_bytes=vmem_limit),
    )(adj_p, support)

    return out_p[:n, :fout]


def graph_convolution(x, weight, adj, *, dropout_p=0.0, training=False,
                      rng_key=None):
    """x: [N, Fin], weight: [Fin, Fout], adj: [N, N] -> relu(adj @ (dropout(x) @ W))."""
    n, fin = x.shape
    assert weight.shape[0] == fin
    assert adj.shape == (n, n)
    use_dropout = bool(training) and float(dropout_p) > 0.0
    if use_dropout and rng_key is None:
        raise ValueError(
            "training=True with dropout>0 requires an explicit rng_key "
            "(a fresh key per forward, matching torch.nn.functional.dropout).")
    key = rng_key if use_dropout else None
    return _gcn_impl(x, weight, adj, key,
                     dropout_p=float(dropout_p), use_dropout=use_dropout)


# ------------------------------ Test helpers ---------------------------------
def xavier_uniform(key, shape, dtype=jnp.float32):
    """torch.nn.init.xavier_uniform_ equivalent for a 2-D weight."""
    fan_in, fan_out = shape
    bound = jnp.sqrt(6.0 / (fan_in + fan_out))
    return jax.random.uniform(key, shape, dtype, minval=-bound, maxval=bound)


def _make_adj(key, n):
    a = jax.random.uniform(key, (n, n), dtype=jnp.float32)
    a = 0.5 * (a + a.T) + jnp.eye(n, dtype=jnp.float32)
    return a / jnp.sum(a, axis=1, keepdims=True)


if __name__ == "__main__":
    key = jax.random.PRNGKey(0)
    k_x, k_w, k_a, k_drop, k_x2, k_w2, k_a2 = jax.random.split(key, 7)

    # ---- Test 1: small shapes matching the module (eval + training). ----
    N, IN_FEATURES, OUT_FEATURES = 64, 32, 32
    DROPOUT = 0.5

    x = jax.random.normal(k_x, (N, IN_FEATURES), dtype=jnp.float32)
    weight = xavier_uniform(k_w, (IN_FEATURES, OUT_FEATURES))
    adj = _make_adj(k_a, N)

    out = jax.block_until_ready(
        graph_convolution(x, weight, adj, dropout_p=DROPOUT, training=False))
    ref = jnp.maximum(adj @ (x @ weight), 0.0)
    assert out.shape == (N, OUT_FEATURES)
    assert jnp.allclose(out, ref, atol=2e-2, rtol=2e-2), "eval-mode mismatch"

    out_tr = jax.block_until_ready(
        graph_convolution(x, weight, adj, dropout_p=DROPOUT, training=True,
                          rng_key=k_drop))
    assert out_tr.shape == (N, OUT_FEATURES)
    assert bool(jnp.all(jnp.isfinite(out_tr)))
    assert bool(jnp.all(out_tr >= 0.0))

    # ---- Test 2: exercises real tiling (multiple row tiles), FOUT padding. ----
    N2, FIN2, FOUT2 = 256, 48, 80
    x2 = jax.random.normal(k_x2, (N2, FIN2), dtype=jnp.float32)
    w2 = xavier_uniform(k_w2, (FIN2, FOUT2))
    adj2 = _make_adj(k_a2, N2)

    out2 = jax.block_until_ready(
        graph_convolution(x2, w2, adj2, dropout_p=0.0, training=False))
    ref2 = jnp.maximum(adj2 @ (x2 @ w2), 0.0)
    assert out2.shape == (N2, FOUT2)
    assert jnp.allclose(out2, ref2, atol=2e-2, rtol=2e-2), "tiled-path mismatch"

    print("KERNEL_OK")
</pallas_src>

<mosaic_0001>
module attributes {stable_mosaic.version = 11 : i64} {
  func.func @_support_kernel(%arg0: i32, %arg1: memref<128x32xbf16, #tpu.memory_space<vmem>>, %arg2: memref<32x128xbf16, #tpu.memory_space<vmem>>, %arg3: memref<128x128xbf16, #tpu.memory_space<vmem>>) attributes {dimension_semantics = [#tpu.dimension_semantics<parallel>], iteration_bounds = array<i64: 1>, scalar_prefetch = 0 : i64, scratch_operands = 0 : i64, tpu.core_type = #tpu.core_type<tc>, window_params = [{transform_indices = @transform_0, window_bounds = array<i64: 128, 32>}, {pipeline_mode = #tpu.pipeline_mode<synchronous>, transform_indices = @transform_1, window_bounds = array<i64: 32, 128>}, {transform_indices = @transform_2, window_bounds = array<i64: 128, 128>}]} {
    %c0 = arith.constant 0 : index
    %c0_0 = arith.constant 0 : index
    %0 = vector.load %arg1[%c0, %c0_0] : memref<128x32xbf16, #tpu.memory_space<vmem>>, vector<128x32xbf16>
    %c0_1 = arith.constant 0 : index
    %c0_2 = arith.constant 0 : index
    %1 = vector.load %arg2[%c0_1, %c0_2] : memref<32x128xbf16, #tpu.memory_space<vmem>>, vector<32x128xbf16>
    %cst = arith.constant dense<0.000000e+00> : vector<128x128xf32>
    %2 = tpu.matmul %0, %1, %cst {dimension_numbers = #tpu.dot_dimension_numbers<[1], [0], [0], [1], [0, 0, 1, 1], [], []>} : vector<128x32xbf16>, vector<32x128xbf16>, vector<128x128xf32> -> vector<128x128xf32>
    %3 = arith.truncf %2 : vector<128x128xf32> to vector<128x128xbf16>
    %c0_3 = arith.constant 0 : index
    %c0_4 = arith.constant 0 : index
    %4 = vector.load %arg3[%c0_3, %c0_4] : memref<128x128xbf16, #tpu.memory_space<vmem>>, vector<128x128xbf16>
    tpu.vector_store %arg3[%c0_3, %c0_4], %3 {strides = array<i32>} : memref<128x128xbf16, #tpu.memory_space<vmem>>, vector<128x128xbf16>,
    return
  }
  func.func @transform_0(%arg0: i32) -> (i32, i32) {
    %c0_i32 = arith.constant 0 : i32
    %c0_i32_0 = arith.constant 0 : i32
    return %arg0, %c0_i32 : i32, i32
  }
  func.func @transform_1(%arg0: i32) -> (i32, i32) {
    %c0_i32 = arith.constant 0 : i32
    %c0_i32_0 = arith.constant 0 : i32
    %c0_i32_1 = arith.constant 0 : i32
    return %c0_i32, %c0_i32_0 : i32, i32
  }
  func.func @transform_2(%arg0: i32) -> (i32, i32) {
    %c0_i32 = arith.constant 0 : i32
    %c0_i32_0 = arith.constant 0 : i32
    return %arg0, %c0_i32 : i32, i32
  }
}

module attributes {stable_mosaic.version = 11 : i64} {
  func.func @_aggregate_kernel(%arg0: i32, %arg1: i32, %arg2: memref<128x128xbf16, #tpu.memory_space<vmem>>, %arg3: memref<128x128xbf16, #tpu.memory_space<vmem>>, %arg4: memref<128x128xf32, #tpu.memory_space<vmem>>) attributes {dimension_semantics = [#tpu.dimension_semantics<parallel>, #tpu.dimension_semantics<arbitrary>], iteration_bounds = array<i64: 1, 1>, scalar_prefetch = 0 : i64, scratch_operands = 0 : i64, tpu.core_type = #tpu.core_type<tc>, window_params = [{transform_indices = @transform_0, window_bounds = array<i64: 128, 128>}, {pipeline_mode = #tpu.pipeline_mode<synchronous>, transform_indices = @transform_1, window_bounds = array<i64: 128, 128>}, {transform_indices = @transform_2, window_bounds = array<i64: 128, 128>}]} {
    %c0_i32 = arith.constant 0 : i32
    %0 = arith.cmpi eq, %arg1, %c0_i32 : i32
    %1 = arith.extui %0 : i1 to i32
    %c0_i32_0 = arith.constant 0 : i32
    %2 = arith.cmpi ne, %1, %c0_i32_0 : i32
    scf.if %2 {
      %cst_10 = arith.constant 0.000000e+00 : f32
      %12 = vector.broadcast %cst_10 : f32 to vector<128x128xf32>
      %c0_11 = arith.constant 0 : index
      %c0_12 = arith.constant 0 : index
      %13 = vector.load %arg4[%c0_11, %c0_12] : memref<128x128xf32, #tpu.memory_space<vmem>>, vector<128x128xf32>
      tpu.vector_store %arg4[%c0_11, %c0_12], %12 {strides = array<i32>} : memref<128x128xf32, #tpu.memory_space<vmem>>, vector<128x128xf32>,
    } else {
    }
    %c0 = arith.constant 0 : index
    %c0_1 = arith.constant 0 : index
    %3 = vector.load %arg4[%c0, %c0_1] : memref<128x128xf32, #tpu.memory_space<vmem>>, vector<128x128xf32>
    %c0_2 = arith.constant 0 : index
    %c0_3 = arith.constant 0 : index
    %4 = vector.load %arg2[%c0_2, %c0_3] : memref<128x128xbf16, #tpu.memory_space<vmem>>, vector<128x128xbf16>
    %c0_4 = arith.constant 0 : index
    %c0_5 = arith.constant 0 : index
    %5 = vector.load %arg3[%c0_4, %c0_5] : memref<128x128xbf16, #tpu.memory_space<vmem>>, vector<128x128xbf16>
    %cst = arith.constant dense<0.000000e+00> : vector<128x128xf32>
    %6 = tpu.matmul %4, %5, %cst {dimension_numbers = #tpu.dot_dimension_numbers<[1], [0], [0], [1], [0, 0, 1, 1], [], []>} : vector<128x128xbf16>, vector<128x128xbf16>, vector<128x128xf32> -> vector<128x128xf32>
    %7 = arith.addf %3, %6 : vector<128x128xf32>
    %c0_6 = arith.constant 0 : index
    %c0_7 = arith.constant 0 : index
    %8 = vector.load %arg4[%c0_6, %c0_7] : memref<128x128xf32, #tpu.memory_space<vmem>>, vector<128x128xf32>
    tpu.vector_store %arg4[%c0_6, %c0_7], %7 {strides = array<i32>} : memref<128x128xf32, #tpu.memory_space<vmem>>, vector<128x128xf32>,
    %c0_i32_8 = arith.constant 0 : i32
    %9 = arith.cmpi eq, %arg1, %c0_i32_8 : i32
    %10 = arith.extui %9 : i1 to i32
    %c0_i32_9 = arith.constant 0 : i32
    %11 = arith.cmpi ne, %10, %c0_i32_9 : i32
    scf.if %11 {
      %c0_10 = arith.constant 0 : index
      %c0_11 = arith.constant 0 : index
      %12 = vector.load %arg4[%c0_10, %c0_11] : memref<128x128xf32, #tpu.memory_space<vmem>>, vector<128x128xf32>
      %cst_12 = arith.constant 0.000000e+00 : f32
      %13 = vector.broadcast %cst_12 : f32 to vector<128x128xf32>
      %14 = arith.maximumf %12, %13 : vector<128x128xf32>
      %c0_13 = arith.constant 0 : index
      %c0_14 = arith.constant 0 : index
      %15 = vector.load %arg4[%c0_13, %c0_14] : memref<128x128xf32, #tpu.memory_space<vmem>>, vector<128x128xf32>
      tpu.vector_store %arg4[%c0_13, %c0_14], %14 {strides = array<i32>} : memref<128x128xf32, #tpu.memory_space<vmem>>, vector<128x128xf32>,
    } else {
    }
    return
  }
  func.func @transform_0(%arg0: i32, %arg1: i32) -> (i32, i32) {
    %c0_i32 = arith.constant 0 : i32
    return %arg0, %arg1 : i32, i32
  }
  func.func @transform_1(%arg0: i32, %arg1: i32) -> (i32, i32) {
    %c0_i32 = arith.constant 0 : i32
    %c0_i32_0 = arith.constant 0 : i32
    %c0_i32_1 = arith.constant 0 : i32
    return %c0_i32, %c0_i32_0 : i32, i32
  }
  func.func @transform_2(%arg0: i32, %arg1: i32) -> (i32, i32) {
    %c0_i32 = arith.constant 0 : i32
    %c0_i32_0 = arith.constant 0 : i32
    return %arg0, %c0_i32 : i32, i32
  }
}

</mosaic_0001>

<bundles_post_ra>
// kernel: _gcn_impl.2
= control target key start
LH: loop header
LB: loop body
LE: loop exit
PB: predicated region body
PF: predicated region fallthrough
CT: control target
= control target key end

     0   :  { %vm84_vm0 = vcmask 261120   ;;  %s508_s1 = inlined_call_operand.vmem [shape: bf16[32,128], index: 1, kind: input, shape index: {}]   ;;  %s509_s0 = inlined_call_operand.vmem [shape: bf16[128,32], index: 0, kind: input, shape index: {}]   ;;  %s510_s2 = inlined_call_operand.vmem [shape: bf16[128,128], index: 2, kind: output, shape index: {}]  }
   0x1   :  { %v421_v0 = vld [vmem:[%s508_s1] sm:$0xff]   ;;  %v422_v1 = vld [vmem:[%s508_s1 + $0x8] sm:$0xff]   ;;  %v427_v6 = vld [vmem:[%s509_s0 + $0x10] sm:$0xff]  }
   0x2   :  { %397 = vmatprep.subr.bf16.mxu0 %v421_v0  ;;  %417 = vmatprep.subr.bf16.mxu1 %v421_v0  ;;  %v423_v2 = vld [vmem:[%s509_s0] sm:$0xff]   ;;  %v425_v4 = vld [vmem:[%s509_s0 + $0x8] sm:$0xff]   ;;  %v428_v7 = vld [vmem:[%s509_s0 + $0x30] sm:$0xff]  }
   0x3   :  { %398 = vmatpush3.bf16.msra.mxu0 %v421_v0  ;;  %419 = vmatpush3.bf16.msra.mxu1 %v421_v0  ;;  %v424_v3 = vld [vmem:[%s509_s0 + $0x20] sm:$0xff]   ;;  %v426_v5 = vld [vmem:[%s509_s0 + $0x28] sm:$0xff]   ;;  %v429_v8 = vld [vmem:[%s509_s0 + $0x18] sm:$0xff]  }
   0x4   :  { %399 = vmatprep.subr.bf16.mxu0 %v422_v1  ;;  %418 = vmatprep.subr.bf16.mxu1 %v422_v1  ;;  %v430_v9 = vld [vmem:[%s509_s0 + $0x38] sm:$0xff]  }
   0x5   :  { %401 = vmatprep.mubr.msk.bf16.mxu0 %vm84_vm0, %v423_v2  ;;  %409 = vmatprep.mubr.msk.bf16.mxu1 %vm84_vm0, %v424_v3 }
   0x7   :  { %400 = vmatpush3.bf16.msra.mxu0 %v422_v1  ;;  %420 = vmatpush3.bf16.msra.mxu1 %v422_v1 }
   0xa   :  { %402 = vmatmul.mubr.msk.bf16.vlgmr.msra.gmra.mrb[0].mxu0 %vm84_vm0, %v425_v4  ;;  %410 = vmatmul.mubr.msk.bf16.vlgmr.msra.gmra.mrb[0].mxu1 %vm84_vm0, %v426_v5 }
   0xb   :  { %405 = vmatprep.mubr.msk.bf16.mxu0 %vm84_vm0, %v427_v6  ;;  %413 = vmatprep.mubr.msk.bf16.mxu1 %vm84_vm0, %v428_v7 }
  0x12   :  { %406 = vmatmul.mubr.msk.bf16.gmra.mrb[4].mxu0 %vm84_vm0, %v429_v8  ;;  %414 = vmatmul.mubr.msk.bf16.gmra.mrb[4].mxu1 %vm84_vm0, %v430_v9 }
  0xdd   :  { %v403_v10 = vpop.f32.mrb[0].mxu0  ;;  %v411_v11 = vpop.f32.mrb[0].mxu1 }
  0xde   :  { %v143_v12 = vpop.f32.mrb[1].mxu0  ;;  %v175_v13 = vpop.f32.mrb[1].mxu1 }
  0xdf   :  { %v404_v14 = vpop.f32.mrb[2].mxu0  ;;  %v412_v15 = vpop.f32.mrb[2].mxu1 }
  0xe0   :  { %v348_v16 = vpack.c.bf16 %v404_v14, %v403_v10  ;;  %v368_v17 = vpack.c.bf16 %v412_v15, %v411_v11  ;;  %v146_v18 = vpop.f32.mrb[3].mxu0  ;;  %v178_v19 = vpop.f32.mrb[3].mxu1 }
  0xe1   :  { %v343_v20 = vpack.c.bf16 %v146_v18, %v143_v12  ;;  %v363_v21 = vpack.c.bf16 %v178_v19, %v175_v13 }
  0xe2   :  { %380 = vst [vmem:[%s510_s2 + $0x8] sm:$0xff] %v348_v16   ;;  %384 = vst [vmem:[%s510_s2 + $0x28] sm:$0xff] %v368_v17  }
  0xe3   :  { %344 = vst [vmem:[%s510_s2] sm:$0xff] %v343_v20   ;;  %383 = vst [vmem:[%s510_s2 + $0x20] sm:$0xff] %v363_v21  }
  0xe5   :  { %v407_v22 = vpop.f32.mrb[4].mxu0  ;;  %v415_v23 = vpop.f32.mrb[4].mxu1 }
  0xe6   :  { %v159_v24 = vpop.f32.mrb[5].mxu0  ;;  %v191_v25 = vpop.f32.mrb[5].mxu1 }
  0xe7   :  { %v408_v26 = vpop.f32.mrb[6].mxu0  ;;  %v416_v27 = vpop.f32.mrb[6].mxu1 }
  0xe8   :  { %v358_v28 = vpack.c.bf16 %v408_v26, %v407_v22  ;;  %v378_v29 = vpack.c.bf16 %v416_v27, %v415_v23  ;;  %v162_v30 = vpop.f32.mrb[7].mxu0  ;;  %v194_v31 = vpop.f32.mrb[7].mxu1 }
  0xe9   :  { %v353_v32 = vpack.c.bf16 %v162_v30, %v159_v24  ;;  %v373_v33 = vpack.c.bf16 %v194_v31, %v191_v25 }
  0xea   :  { %382 = vst [vmem:[%s510_s2 + $0x18] sm:$0xff] %v358_v28   ;;  %386 = vst [vmem:[%s510_s2 + $0x38] sm:$0xff] %v378_v29  }
  0xeb   :  { %381 = vst [vmem:[%s510_s2 + $0x10] sm:$0xff] %v353_v32   ;;  %385 = vst [vmem:[%s510_s2 + $0x30] sm:$0xff] %v373_v33  }

// kernel: _gcn_impl.3
= control target key start
LH: loop header
LB: loop body
LE: loop exit
PB: predicated region body
PF: predicated region fallthrough
CT: control target
= control target key end

     0   :  { %s568_s1 = inlined_call_operand.vmem [shape: bf16[128,128], index: 1, kind: input, shape index: {}]   ;;  %s569_s0 = inlined_call_operand.vmem [shape: bf16[128,128], index: 0, kind: input, shape index: {}]   ;;  %s570_s2 = inlined_call_operand.vmem [shape: f32[128,128], index: 2, kind: output, shape index: {}]  }
   0x1   :  { %v441_v0 = vld [vmem:[%s568_s1] sm:$0xff]   ;;  %v442_v1 = vld [vmem:[%s568_s1 + $0x8] sm:$0xff]   ;;  %v443_v2 = vld [vmem:[%s568_s1 + $0x10] sm:$0xff]  }
   0x2   :  { %392 = vmatprep.subr.bf16.mxu0 %v441_v0  ;;  %424 = vmatprep.subr.bf16.mxu1 %v441_v0  ;;  %v444_v3 = vld [vmem:[%s568_s1 + $0x18] sm:$0xff]   ;;  %v449_v4 = vld [vmem:[%s569_s0] sm:$0xff]   ;;  %v446_v7 = vld [vmem:[%s568_s1 + $0x28] sm:$0xff]  }
   0x3   :  { %393 = vmatpush3.bf16.msra.mxu0 %v441_v0  ;;  %432 = vmatpush3.bf16.msra.mxu1 %v441_v0  ;;  %v450_v5 = vld [vmem:[%s569_s0 + $0x20] sm:$0xff]   ;;  %v447_v8 = vld [vmem:[%s568_s1 + $0x30] sm:$0xff]   ;;  %v448_v9 = vld [vmem:[%s568_s1 + $0x38] sm:$0xff]  }
   0x4   :  { %394 = vmatprep.subr.bf16.mxu0 %v442_v1  ;;  %425 = vmatprep.subr.bf16.mxu1 %v442_v1  ;;  %v445_v6 = vld [vmem:[%s568_s1 + $0x20] sm:$0xff]   ;;  %v451_v10 = vld [vmem:[%s569_s0 + $0x8] sm:$0xff]   ;;  %v453_v12 = vld [vmem:[%s569_s0 + $0x10] sm:$0xff]  }
   0x5   :  { %408 = vmatprep.mubr.bf16.mxu0 %v449_v4  ;;  %416 = vmatprep.mubr.bf16.mxu1 %v450_v5  ;;  %v452_v11 = vld [vmem:[%s569_s0 + $0x28] sm:$0xff]   ;;  %v454_v13 = vld [vmem:[%s569_s0 + $0x30] sm:$0xff]   ;;  %v455_v14 = vld [vmem:[%s569_s0 + $0x18] sm:$0xff]  }
   0x6   :  { %v456_v15 = vld [vmem:[%s569_s0 + $0x38] sm:$0xff]  }
   0x7   :  { %395 = vmatpush3.bf16.msra.mxu0 %v442_v1  ;;  %433 = vmatpush3.bf16.msra.mxu1 %v442_v1 }
   0x8   :  { %396 = vmatprep.subr.bf16.mxu0 %v443_v2  ;;  %426 = vmatprep.subr.bf16.mxu1 %v443_v2 }
   0xb   :  { %397 = vmatpush3.bf16.msra.mxu0 %v443_v2  ;;  %434 = vmatpush3.bf16.msra.mxu1 %v443_v2 }
   0xc   :  { %398 = vmatprep.subr.bf16.mxu0 %v444_v3  ;;  %427 = vmatprep.subr.bf16.mxu1 %v444_v3 }
   0xf   :  { %399 = vmatpush3.bf16.msra.mxu0 %v444_v3  ;;  %435 = vmatpush3.bf16.msra.mxu1 %v444_v3 }
  0x10   :  { %400 = vmatprep.subr.bf16.mxu0 %v445_v6  ;;  %428 = vmatprep.subr.bf16.mxu1 %v445_v6 }
  0x13   :  { %401 = vmatpush3.bf16.msra.mxu0 %v445_v6  ;;  %436 = vmatpush3.bf16.msra.mxu1 %v445_v6 }
  0x14   :  { %402 = vmatprep.subr.bf16.mxu0 %v446_v7  ;;  %429 = vmatprep.subr.bf16.mxu1 %v446_v7 }
  0x17   :  { %403 = vmatpush3.bf16.msra.mxu0 %v446_v7  ;;  %437 = vmatpush3.bf16.msra.mxu1 %v446_v7 }
  0x18   :  { %404 = vmatprep.subr.bf16.mxu0 %v447_v8  ;;  %430 = vmatprep.subr.bf16.mxu1 %v447_v8 }
  0x1b   :  { %405 = vmatpush3.bf16.msra.mxu0 %v447_v8  ;;  %438 = vmatpush3.bf16.msra.mxu1 %v447_v8 }
  0x1c   :  { %406 = vmatprep.subr.bf16.mxu0 %v448_v9  ;;  %431 = vmatprep.subr.bf16.mxu1 %v448_v9 }
  0x1f   :  { %407 = vmatpush3.bf16.msra.mxu0 %v448_v9  ;;  %439 = vmatpush3.bf16.msra.mxu1 %v448_v9 }
  0x22   :  { %409 = vmatmul.mubr.bf16.vlgmr.msra.gmra.mrb[0].mxu0 %v451_v10  ;;  %417 = vmatmul.mubr.bf16.vlgmr.msra.gmra.mrb[0].mxu1 %v452_v11 }
  0x23   :  { %412 = vmatprep.mubr.bf16.mxu0 %v453_v12  ;;  %420 = vmatprep.mubr.bf16.mxu1 %v454_v13 }
  0x2a   :  { %413 = vmatmul.mubr.bf16.gmra.mrb[4].mxu0 %v455_v14  ;;  %421 = vmatmul.mubr.bf16.gmra.mrb[4].mxu1 %v456_v15 }
  0xf5   :  { %v410_v16 = vpop.f32.mrb[0].mxu0  ;;  %v418_v17 = vpop.f32.mrb[0].mxu1 }
  0xf6   :  { %v210_v18 = vpop.f32.mrb[1].mxu0  ;;  %v242_v19 = vpop.f32.mrb[1].mxu1  ;;  %v326_v22 = vmax.f32 %v410_v16, 0.0  ;;  %v334_v23 = vmax.f32 %v418_v17, 0.0 }
  0xf7   :  { %v411_v20 = vpop.f32.mrb[2].mxu0  ;;  %v419_v21 = vpop.f32.mrb[2].mxu1  ;;  %v324_v26 = vmax.f32 %v210_v18, 0.0  ;;  %v332_v27 = vmax.f32 %v242_v19, 0.0 }
  0xf8   :  { %v213_v24 = vpop.f32.mrb[3].mxu0  ;;  %v245_v25 = vpop.f32.mrb[3].mxu1  ;;  %342 = vst [vmem:[%s570_s2 + $0x10] sm:$0xff] %v326_v22  ;;  %350 = vst [vmem:[%s570_s2 + $0x50] sm:$0xff] %v334_v23  ;;  %v327_v28 = vmax.f32 %v411_v20, 0.0  ;;  %v335_v29 = vmax.f32 %v419_v21, 0.0 }
  0xf9   :  { %340 = vst [vmem:[%s570_s2] sm:$0xff] %v324_v26  ;;  %348 = vst [vmem:[%s570_s2 + $0x40] sm:$0xff] %v332_v27  ;;  %v325_v30 = vmax.f32 %v213_v24, 0.0  ;;  %v333_v31 = vmax.f32 %v245_v25, 0.0 }
  0xfa   :  { %343 = vst [vmem:[%s570_s2 + $0x18] sm:$0xff] %v327_v28  ;;  %351 = vst [vmem:[%s570_s2 + $0x58] sm:$0xff] %v335_v29 }
  0xfb   :  { %341 = vst [vmem:[%s570_s2 + $0x8] sm:$0xff] %v325_v30  ;;  %349 = vst [vmem:[%s570_s2 + $0x48] sm:$0xff] %v333_v31 }
  0xfd   :  { %v414_v32 = vpop.f32.mrb[4].mxu0  ;;  %v422_v33 = vpop.f32.mrb[4].mxu1 }
  0xfe   :  { %v226_v34 = vpop.f32.mrb[5].mxu0  ;;  %v258_v35 = vpop.f32.mrb[5].mxu1  ;;  %v330_v38 = vmax.f32 %v414_v32, 0.0  ;;  %v338_v39 = vmax.f32 %v422_v33, 0.0 }
  0xff   :  { %v415_v36 = vpop.f32.mrb[6].mxu0  ;;  %v423_v37 = vpop.f32.mrb[6].mxu1  ;;  %v328_v42 = vmax.f32 %v226_v34, 0.0  ;;  %v336_v43 = vmax.f32 %v258_v35, 0.0 }
 0x100   :  { %v229_v40 = vpop.f32.mrb[7].mxu0  ;;  %v261_v41 = vpop.f32.mrb[7].mxu1  ;;  %346 = vst [vmem:[%s570_s2 + $0x30] sm:$0xff] %v330_v38  ;;  %354 = vst [vmem:[%s570_s2 + $0x70] sm:$0xff] %v338_v39  ;;  %v331_v44 = vmax.f32 %v415_v36, 0.0  ;;  %v339_v45 = vmax.f32 %v423_v37, 0.0 }
 0x101   :  { %344 = vst [vmem:[%s570_s2 + $0x20] sm:$0xff] %v328_v42  ;;  %352 = vst [vmem:[%s570_s2 + $0x60] sm:$0xff] %v336_v43  ;;  %v329_v46 = vmax.f32 %v229_v40, 0.0  ;;  %v337_v47 = vmax.f32 %v261_v41, 0.0 }
 0x102   :  { %347 = vst [vmem:[%s570_s2 + $0x38] sm:$0xff] %v331_v44  ;;  %355 = vst [vmem:[%s570_s2 + $0x78] sm:$0xff] %v339_v45 }
 0x103   :  { %345 = vst [vmem:[%s570_s2 + $0x28] sm:$0xff] %v329_v46  ;;  %353 = vst [vmem:[%s570_s2 + $0x68] sm:$0xff] %v337_v47 }

</bundles_post_ra>
